<compile_context>
chip_gen: v6e
topology: v6e:2x2x1
jax: 0.10.0
libtpu: 0.0.40
codegen_flags: <defaults>
</compile_context>

<pallas_src>
import functools

import jax
import jax.numpy as jnp
from jax import lax
from jax.experimental import pallas as pl
from jax.experimental.pallas import tpu as pltpu


_F32_TINY = float(jnp.finfo(jnp.float32).tiny)


def _quat_rigid_kernel(x_ref, w_ref, b_ref, out_ref, *, full_quat):
    # Linear in a transposed, lane-dense layout: rigid = W @ X^T.
    #   x_ref: [tile_n, C]  (native dtype, bf16 or f32)
    #   w_ref: [rigid_dim, C] (same dtype as x)
    #   b_ref: [rigid_dim, 1] f32
    # MXU accumulates in f32; f32 inputs keep HIGHEST (multi-pass) precision to
    # match the PyTorch module's f32 Linear, bf16 inputs take the single pass.
    prec = (lax.Precision.HIGHEST if x_ref.dtype == jnp.float32
            else lax.Precision.DEFAULT)
    rigid = lax.dot_general(
        w_ref[...], x_ref[...],
        dimension_numbers=(((1,), (1,)), ((), ())),
        precision=prec,
        preferred_element_type=jnp.float32,
    )                                                    # [rigid_dim, tile_n]
    rigid = rigid + b_ref[...]                           # bias: [rigid_dim, 1]

    if full_quat:
        qw = rigid[0:1, :]
        qx = rigid[1:2, :]
        qy = rigid[2:3, :]
        qz = rigid[3:4, :]
        trans = rigid[4:7, :]                            # [3, tile_n]
    else:
        qx = rigid[0:1, :]
        qy = rigid[1:2, :]
        qz = rigid[2:3, :]
        qw = jnp.ones_like(qx)
        trans = rigid[3:6, :]                            # [3, tile_n]

    # Rot3Array.from_quaternion(..., normalize=True).  The tiny-clamp only
    # affects all-zero (padded) rows -> finite identity-ish output instead of
    # NaN; it is exact for any real quaternion.
    norm = qw * qw + qx * qx + qy * qy + qz * qz
    inv_norm = lax.rsqrt(jnp.maximum(norm, _F32_TINY))
    w_ = qw * inv_norm
    i_ = qx * inv_norm
    j_ = qy * inv_norm
    k_ = qz * inv_norm

    # Direct lane-dense sub-row stores (no concatenate / sublane repack).
    out_ref[0:1, :] = 1.0 - 2.0 * (j_ * j_ + k_ * k_)    # xx
    out_ref[1:2, :] = 2.0 * (i_ * j_ - k_ * w_)          # xy
    out_ref[2:3, :] = 2.0 * (i_ * k_ + j_ * w_)          # xz
    out_ref[3:4, :] = 2.0 * (i_ * j_ + k_ * w_)          # yx
    out_ref[4:5, :] = 1.0 - 2.0 * (i_ * i_ + k_ * k_)    # yy
    out_ref[5:6, :] = 2.0 * (j_ * k_ - i_ * w_)          # yz
    out_ref[6:7, :] = 2.0 * (i_ * k_ - j_ * w_)          # zx
    out_ref[7:8, :] = 2.0 * (j_ * k_ + i_ * w_)          # zy
    out_ref[8:9, :] = 1.0 - 2.0 * (i_ * i_ + j_ * j_)    # zz
    out_ref[9:12, :] = trans                             # translation


def _vmem_budget():
    """(vmem_limit_bytes for the compiler, byte budget for tile sizing)."""
    try:
        phys = int(pltpu.get_tpu_info().vmem_capacity_bytes)
    except Exception:
        phys = 64 << 20        # conservative fallback = v7x per-TensorCore VMEM
    vmem_limit = min(phys * 3 // 4, 100 << 20)
    tile_budget = vmem_limit * 3 // 4      # headroom for compiler scratch
    return vmem_limit, tile_budget


def _choose_tile_n(n, c, x_itemsize, tile_budget):
    """Largest multiple-of-128 row tile that double-buffers within the budget."""
    per_row = 2 * c * x_itemsize           # double-buffered [tile_n, C] input
    per_row += 2 * 12 * 4                  # double-buffered [12, tile_n] f32 out
    per_row += 16 * 4                      # rigid rows + quaternion temps (f32)
    per_row += c * 4                       # slack for any MXU staging copy
    fixed = 2 * 8 * max(c, 128) * 4 + (256 << 10)   # weight/bias tiles + misc
    tile = max(128, (tile_budget - fixed) // max(per_row, 1))
    tile = (tile // 128) * 128
    tile = max(128, min(tile, 2048))       # 1024-2048 is the measured sweet spot
    if n > 128:
        # v7x has 2 TensorCores: keep at least 2 grid steps when N allows it.
        half = -(-n // 2)                  # ceil(N / 2)
        half = -(-half // 128) * 128       # round up to a lane multiple
        tile = min(tile, max(128, half))
    return int(tile)


@functools.partial(jax.jit, static_argnames=("full_quat", "tile_n"))
def quat_rigid(activations, weight, bias, *, full_quat, tile_n=None):
    """QuatRigid forward.

    activations: [N, C] (f32 or bf16).
    weight:      [rigid_dim, C]  -- torch.nn.Linear layout (out_features, in_features).
    bias:        [rigid_dim].
    Returns (rotation [N, 3, 3] f32, translation [N, 3] f32), i.e. the content
    of Rigid3Array(Rot3Array(...), Vec3Array(...)).
    """
    n, c = activations.shape
    rigid_dim = 7 if full_quat else 6
    assert weight.shape == (rigid_dim, c), (
        "weight must be in torch.nn.Linear layout [rigid_dim, c_hidden] = "
        f"({rigid_dim}, {c}); got {weight.shape}")
    assert bias.shape == (rigid_dim,)

    vmem_limit, tile_budget = _vmem_budget()
    if tile_n is None:
        tile_n = _choose_tile_n(n, c, activations.dtype.itemsize, tile_budget)
    assert tile_n % 128 == 0, "tile_n must be a multiple of 128 (lane width)"

    n_tiles = pl.cdiv(n, tile_n)
    n_pad = n_tiles * tile_n
    x = activations
    if n_pad != n:
        x = jnp.pad(x, ((0, n_pad - n), (0, 0)))

    # Weight is tiny: cast it to the activation dtype so the big tile is fed to
    # the MXU without an in-kernel full-tile upcast copy.
    w = weight.astype(x.dtype)
    b2d = bias.reshape(rigid_dim, 1).astype(jnp.float32)

    kernel = functools.partial(_quat_rigid_kernel, full_quat=full_quat)

    out = pl.pallas_call(
        kernel,
        out_shape=jax.ShapeDtypeStruct((12, n_pad), jnp.float32),
        grid_spec=pltpu.PrefetchScalarGridSpec(
            num_scalar_prefetch=0,
            grid=(n_tiles,),
            in_specs=[
                pl.BlockSpec((tile_n, c), lambda i: (i, 0)),
                pl.BlockSpec((rigid_dim, c), lambda i: (0, 0)),
                pl.BlockSpec((rigid_dim, 1), lambda i: (0, 0)),
            ],
            out_specs=pl.BlockSpec((12, tile_n), lambda i: (0, i)),
        ),
        compiler_params=pltpu.CompilerParams(
            dimension_semantics=("parallel",),
            vmem_limit_bytes=int(vmem_limit),
        ),
    )(x, w, b2d)

    # Single slice+transpose pass (fused under jit), then cheap reshapes.
    out_t = out[:, :n].T                  # [N, 12]
    rotation = out_t[:, :9].reshape(n, 3, 3)
    translation = out_t[:, 9:12]
    return rotation, translation


def _reference(activations, weight, bias, full_quat):
    """Pure-JAX reference of the PyTorch forward (weight in [rigid_dim, C])."""
    prec = (lax.Precision.HIGHEST if activations.dtype == jnp.float32
            else lax.Precision.DEFAULT)
    rigid = jnp.dot(activations, weight.astype(activations.dtype).T,
                    precision=prec,
                    preferred_element_type=jnp.float32) + bias.astype(jnp.float32)
    if full_quat:
        qw, qx, qy, qz = rigid[:, 0], rigid[:, 1], rigid[:, 2], rigid[:, 3]
        t = rigid[:, 4:7]
    else:
        qx, qy, qz = rigid[:, 0], rigid[:, 1], rigid[:, 2]
        qw = jnp.ones_like(qx)
        t = rigid[:, 3:6]
    inv = 1.0 / jnp.sqrt(qw**2 + qx**2 + qy**2 + qz**2)
    w, i, j, k = qw * inv, qx * inv, qy * inv, qz * inv
    rot = jnp.stack(
        [
            1 - 2 * (j * j + k * k), 2 * (i * j - k * w), 2 * (i * k + j * w),
            2 * (i * j + k * w), 1 - 2 * (i * i + k * k), 2 * (j * k - i * w),
            2 * (i * k - j * w), 2 * (j * k + i * w), 1 - 2 * (i * i + j * j),
        ],
        axis=-1,
    ).reshape(-1, 3, 3)
    return rot, t


if __name__ == "__main__":
    key = jax.random.PRNGKey(0)
    N, C_HIDDEN = 300, 32          # N deliberately NOT a multiple of the tile

    case = 0
    for full_quat in (True, False):
        for dtype in (jnp.float32, jnp.bfloat16):
            case += 1
            rigid_dim = 7 if full_quat else 6
            k_x, k_w = jax.random.split(jax.random.fold_in(key, case))

            x = jax.random.normal(k_x, (N, C_HIDDEN), dtype=jnp.float32)
            weight = jax.random.normal(k_w, (rigid_dim, C_HIDDEN),
                                       dtype=jnp.float32)
            weight = weight * (1.0 / jnp.sqrt(jnp.float32(C_HIDDEN)))
            bias = jnp.linspace(-0.1, 0.1, rigid_dim).astype(jnp.float32)
            x = x.astype(dtype)

            rotation, translation = quat_rigid(x, weight, bias,
                                               full_quat=full_quat)
            jax.block_until_ready((rotation, translation))

            rot_ref, trans_ref = _reference(x, weight, bias, full_quat)
            assert rotation.shape == (N, 3, 3) and translation.shape == (N, 3)
            tol = 1e-5 if dtype == jnp.float32 else 2e-3
            assert jnp.allclose(rotation, rot_ref, atol=tol, rtol=tol), (
                full_quat, dtype)
            assert jnp.allclose(translation, trans_ref, atol=tol, rtol=tol), (
                full_quat, dtype)

    print("KERNEL_OK")
</pallas_src>

<mosaic_0001>
module attributes {stable_mosaic.version = 11 : i64} {
  func.func @_quat_rigid_kernel(%arg0: i32, %arg1: memref<256x32xf32, #tpu.memory_space<vmem>>, %arg2: memref<7x32xf32, #tpu.memory_space<vmem>>, %arg3: memref<7x1xf32, #tpu.memory_space<vmem>>, %arg4: memref<12x256xf32, #tpu.memory_space<vmem>>) attributes {dimension_semantics = [#tpu.dimension_semantics<parallel>], iteration_bounds = array<i64: 2>, scalar_prefetch = 0 : i64, scratch_operands = 0 : i64, tpu.core_type = #tpu.core_type<tc>, window_params = [{transform_indices = @transform_0, window_bounds = array<i64: 256, 32>}, {pipeline_mode = #tpu.pipeline_mode<synchronous>, transform_indices = @transform_1, window_bounds = array<i64: 7, 32>}, {pipeline_mode = #tpu.pipeline_mode<synchronous>, transform_indices = @transform_2, window_bounds = array<i64: 7, 1>}, {transform_indices = @transform_3, window_bounds = array<i64: 12, 256>}]} {
    %c0 = arith.constant 0 : index
    %c0_0 = arith.constant 0 : index
    %0 = vector.load %arg2[%c0, %c0_0] : memref<7x32xf32, #tpu.memory_space<vmem>>, vector<7x32xf32>
    %c0_1 = arith.constant 0 : index
    %c0_2 = arith.constant 0 : index
    %1 = vector.load %arg1[%c0_1, %c0_2] : memref<256x32xf32, #tpu.memory_space<vmem>>, vector<256x32xf32>
    %cst = arith.constant dense<0.000000e+00> : vector<7x256xf32>
    %2 = tpu.matmul %0, %1, %cst {dimension_numbers = #tpu.dot_dimension_numbers<[1], [1], [0], [0], [0, 0, 1, 0], [], []>, precision = #tpu.contract_precision<fp32>} : vector<7x32xf32>, vector<256x32xf32>, vector<7x256xf32> -> vector<7x256xf32>
    %c0_3 = arith.constant 0 : index
    %c0_4 = arith.constant 0 : index
    %3 = vector.load %arg3[%c0_3, %c0_4] : memref<7x1xf32, #tpu.memory_space<vmem>>, vector<7x1xf32>
    %4 = vector.broadcast %3 : vector<7x1xf32> to vector<7x256xf32>
    %5 = arith.addf %2, %4 : vector<7x256xf32>
    %6 = vector.extract_strided_slice %5 {offsets = [0, 0], sizes = [1, 256], strides = [1, 1]} : vector<7x256xf32> to vector<1x256xf32>
    %7 = vector.extract_strided_slice %5 {offsets = [1, 0], sizes = [1, 256], strides = [1, 1]} : vector<7x256xf32> to vector<1x256xf32>
    %8 = vector.extract_strided_slice %5 {offsets = [2, 0], sizes = [1, 256], strides = [1, 1]} : vector<7x256xf32> to vector<1x256xf32>
    %9 = vector.extract_strided_slice %5 {offsets = [3, 0], sizes = [1, 256], strides = [1, 1]} : vector<7x256xf32> to vector<1x256xf32>
    %10 = vector.extract_strided_slice %5 {offsets = [4, 0], sizes = [3, 256], strides = [1, 1]} : vector<7x256xf32> to vector<3x256xf32>
    %11 = arith.mulf %6, %6 : vector<1x256xf32>
    %12 = arith.mulf %7, %7 : vector<1x256xf32>
    %13 = arith.addf %11, %12 : vector<1x256xf32>
    %14 = arith.mulf %8, %8 : vector<1x256xf32>
    %15 = arith.addf %13, %14 : vector<1x256xf32>
    %16 = arith.mulf %9, %9 : vector<1x256xf32>
    %17 = arith.addf %15, %16 : vector<1x256xf32>
    %cst_5 = arith.constant 1.17549435E-38 : f32
    %18 = vector.broadcast %cst_5 : f32 to vector<1x256xf32>
    %19 = arith.maximumf %17, %18 : vector<1x256xf32>
    %20 = math.rsqrt %19 : vector<1x256xf32>
    %21 = arith.mulf %6, %20 : vector<1x256xf32>
    %22 = arith.mulf %7, %20 : vector<1x256xf32>
    %23 = arith.mulf %8, %20 : vector<1x256xf32>
    %24 = arith.mulf %9, %20 : vector<1x256xf32>
    %25 = arith.mulf %23, %23 : vector<1x256xf32>
    %26 = arith.mulf %24, %24 : vector<1x256xf32>
    %27 = arith.addf %25, %26 : vector<1x256xf32>
    %cst_6 = arith.constant 2.000000e+00 : f32
    %28 = vector.broadcast %cst_6 : f32 to vector<1x256xf32>
    %29 = arith.mulf %28, %27 : vector<1x256xf32>
    %cst_7 = arith.constant 1.000000e+00 : f32
    %30 = vector.broadcast %cst_7 : f32 to vector<1x256xf32>
    %31 = arith.subf %30, %29 : vector<1x256xf32>
    %c0_8 = arith.constant 0 : index
    %c0_9 = arith.constant 0 : index
    %32 = vector.load %arg4[%c0_8, %c0_9] : memref<12x256xf32, #tpu.memory_space<vmem>>, vector<1x256xf32>
    tpu.vector_store %arg4[%c0_8, %c0_9], %31 {strides = array<i32>} : memref<12x256xf32, #tpu.memory_space<vmem>>, vector<1x256xf32>,
    %33 = arith.mulf %22, %23 : vector<1x256xf32>
    %34 = arith.mulf %24, %21 : vector<1x256xf32>
    %35 = arith.subf %33, %34 : vector<1x256xf32>
    %cst_10 = arith.constant 2.000000e+00 : f32
    %36 = vector.broadcast %cst_10 : f32 to vector<1x256xf32>
    %37 = arith.mulf %36, %35 : vector<1x256xf32>
    %c1 = arith.constant 1 : index
    %c0_11 = arith.constant 0 : index
    %38 = vector.load %arg4[%c1, %c0_11] : memref<12x256xf32, #tpu.memory_space<vmem>>, vector<1x256xf32>
    tpu.vector_store %arg4[%c1, %c0_11], %37 {strides = array<i32>} : memref<12x256xf32, #tpu.memory_space<vmem>>, vector<1x256xf32>,
    %39 = arith.mulf %22, %24 : vector<1x256xf32>
    %40 = arith.mulf %23, %21 : vector<1x256xf32>
    %41 = arith.addf %39, %40 : vector<1x256xf32>
    %cst_12 = arith.constant 2.000000e+00 : f32
    %42 = vector.broadcast %cst_12 : f32 to vector<1x256xf32>
    %43 = arith.mulf %42, %41 : vector<1x256xf32>
    %c2 = arith.constant 2 : index
    %c0_13 = arith.constant 0 : index
    %44 = vector.load %arg4[%c2, %c0_13] : memref<12x256xf32, #tpu.memory_space<vmem>>, vector<1x256xf32>
    tpu.vector_store %arg4[%c2, %c0_13], %43 {strides = array<i32>} : memref<12x256xf32, #tpu.memory_space<vmem>>, vector<1x256xf32>,
    %45 = arith.mulf %22, %23 : vector<1x256xf32>
    %46 = arith.mulf %24, %21 : vector<1x256xf32>
    %47 = arith.addf %45, %46 : vector<1x256xf32>
    %cst_14 = arith.constant 2.000000e+00 : f32
    %48 = vector.broadcast %cst_14 : f32 to vector<1x256xf32>
    %49 = arith.mulf %48, %47 : vector<1x256xf32>
    %c3 = arith.constant 3 : index
    %c0_15 = arith.constant 0 : index
    %50 = vector.load %arg4[%c3, %c0_15] : memref<12x256xf32, #tpu.memory_space<vmem>>, vector<1x256xf32>
    tpu.vector_store %arg4[%c3, %c0_15], %49 {strides = array<i32>} : memref<12x256xf32, #tpu.memory_space<vmem>>, vector<1x256xf32>,
    %51 = arith.mulf %22, %22 : vector<1x256xf32>
    %52 = arith.mulf %24, %24 : vector<1x256xf32>
    %53 = arith.addf %51, %52 : vector<1x256xf32>
    %cst_16 = arith.constant 2.000000e+00 : f32
    %54 = vector.broadcast %cst_16 : f32 to vector<1x256xf32>
    %55 = arith.mulf %54, %53 : vector<1x256xf32>
    %cst_17 = arith.constant 1.000000e+00 : f32
    %56 = vector.broadcast %cst_17 : f32 to vector<1x256xf32>
    %57 = arith.subf %56, %55 : vector<1x256xf32>
    %c4 = arith.constant 4 : index
    %c0_18 = arith.constant 0 : index
    %58 = vector.load %arg4[%c4, %c0_18] : memref<12x256xf32, #tpu.memory_space<vmem>>, vector<1x256xf32>
    tpu.vector_store %arg4[%c4, %c0_18], %57 {strides = array<i32>} : memref<12x256xf32, #tpu.memory_space<vmem>>, vector<1x256xf32>,
    %59 = arith.mulf %23, %24 : vector<1x256xf32>
    %60 = arith.mulf %22, %21 : vector<1x256xf32>
    %61 = arith.subf %59, %60 : vector<1x256xf32>
    %cst_19 = arith.constant 2.000000e+00 : f32
    %62 = vector.broadcast %cst_19 : f32 to vector<1x256xf32>
    %63 = arith.mulf %62, %61 : vector<1x256xf32>
    %c5 = arith.constant 5 : index
    %c0_20 = arith.constant 0 : index
    %64 = vector.load %arg4[%c5, %c0_20] : memref<12x256xf32, #tpu.memory_space<vmem>>, vector<1x256xf32>
    tpu.vector_store %arg4[%c5, %c0_20], %63 {strides = array<i32>} : memref<12x256xf32, #tpu.memory_space<vmem>>, vector<1x256xf32>,
    %65 = arith.mulf %22, %24 : vector<1x256xf32>
    %66 = arith.mulf %23, %21 : vector<1x256xf32>
    %67 = arith.subf %65, %66 : vector<1x256xf32>
    %cst_21 = arith.constant 2.000000e+00 : f32
    %68 = vector.broadcast %cst_21 : f32 to vector<1x256xf32>
    %69 = arith.mulf %68, %67 : vector<1x256xf32>
    %c6 = arith.constant 6 : index
    %c0_22 = arith.constant 0 : index
    %70 = vector.load %arg4[%c6, %c0_22] : memref<12x256xf32, #tpu.memory_space<vmem>>, vector<1x256xf32>
    tpu.vector_store %arg4[%c6, %c0_22], %69 {strides = array<i32>} : memref<12x256xf32, #tpu.memory_space<vmem>>, vector<1x256xf32>,
    %71 = arith.mulf %23, %24 : vector<1x256xf32>
    %72 = arith.mulf %22, %21 : vector<1x256xf32>
    %73 = arith.addf %71, %72 : vector<1x256xf32>
    %cst_23 = arith.constant 2.000000e+00 : f32
    %74 = vector.broadcast %cst_23 : f32 to vector<1x256xf32>
    %75 = arith.mulf %74, %73 : vector<1x256xf32>
    %c7 = arith.constant 7 : index
    %c0_24 = arith.constant 0 : index
    %76 = vector.load %arg4[%c7, %c0_24] : memref<12x256xf32, #tpu.memory_space<vmem>>, vector<1x256xf32>
    tpu.vector_store %arg4[%c7, %c0_24], %75 {strides = array<i32>} : memref<12x256xf32, #tpu.memory_space<vmem>>, vector<1x256xf32>,
    %77 = arith.mulf %22, %22 : vector<1x256xf32>
    %78 = arith.mulf %23, %23 : vector<1x256xf32>
    %79 = arith.addf %77, %78 : vector<1x256xf32>
    %cst_25 = arith.constant 2.000000e+00 : f32
    %80 = vector.broadcast %cst_25 : f32 to vector<1x256xf32>
    %81 = arith.mulf %80, %79 : vector<1x256xf32>
    %cst_26 = arith.constant 1.000000e+00 : f32
    %82 = vector.broadcast %cst_26 : f32 to vector<1x256xf32>
    %83 = arith.subf %82, %81 : vector<1x256xf32>
    %c8 = arith.constant 8 : index
    %c0_27 = arith.constant 0 : index
    %84 = vector.load %arg4[%c8, %c0_27] : memref<12x256xf32, #tpu.memory_space<vmem>>, vector<1x256xf32>
    tpu.vector_store %arg4[%c8, %c0_27], %83 {strides = array<i32>} : memref<12x256xf32, #tpu.memory_space<vmem>>, vector<1x256xf32>,
    %c9 = arith.constant 9 : index
    %c0_28 = arith.constant 0 : index
    %85 = vector.load %arg4[%c9, %c0_28] : memref<12x256xf32, #tpu.memory_space<vmem>>, vector<3x256xf32>
    tpu.vector_store %arg4[%c9, %c0_28], %10 {strides = array<i32>} : memref<12x256xf32, #tpu.memory_space<vmem>>, vector<3x256xf32>,
    return
  }
  func.func @transform_0(%arg0: i32) -> (i32, i32) {
    %c0_i32 = arith.constant 0 : i32
    %c0_i32_0 = arith.constant 0 : i32
    return %arg0, %c0_i32 : i32, i32
  }
  func.func @transform_1(%arg0: i32) -> (i32, i32) {
    %c0_i32 = arith.constant 0 : i32
    %c0_i32_0 = arith.constant 0 : i32
    %c0_i32_1 = arith.constant 0 : i32
    return %c0_i32, %c0_i32_0 : i32, i32
  }
  func.func @transform_2(%arg0: i32) -> (i32, i32) {
    %c0_i32 = arith.constant 0 : i32
    %c0_i32_0 = arith.constant 0 : i32
    %c0_i32_1 = arith.constant 0 : i32
    return %c0_i32, %c0_i32_0 : i32, i32
  }
  func.func @transform_3(%arg0: i32) -> (i32, i32) {
    %c0_i32 = arith.constant 0 : i32
    %c0_i32_0 = arith.constant 0 : i32
    return %c0_i32, %arg0 : i32, i32
  }
}

</mosaic_0001>

<bundles_post_ra>
// kernel: quat_rigid.1
= control target key start
LH: loop header
LB: loop body
LE: loop exit
PB: predicated region body
PF: predicated region fallthrough
CT: control target
= control target key end

     0   :  { %s1929_s12 = smov 0   ;;  %s1931_s13 = smov 0   ;;  %s2650_s0 = inlined_call_operand.vmem [shape: f32[512,32], index: 0, kind: input, shape index: {}]   ;;  %s2651_s1 = inlined_call_operand.vmem [shape: f32[7,32], index: 1, kind: input, shape index: {}]   ;;  %s2652_s2 = inlined_call_operand.vmem [shape: f32[7,1], index: 2, kind: input, shape index: {}]   ;;  %s2653_s3 = inlined_call_operand.vmem [shape: f32[12,512], index: 3, kind: output, shape index: {}]  }
   0x1   :  { %s1933_s14 = smov 0  }
   0x2 LB: > { %s1942_s15 = sadd.s32 4294967295, %s1905_s14   ;;  %s1944_s16 = sadd.s32 1, %s1905_s14   ;;  %s1905_s14 = sphi %s1933_s14, %s2804_s14   ;;  %s1901_s13 = sphi %s1931_s13, %s2803_s13   ;;  %s1897_s12 = sphi %s1929_s12, %s2802_s12  }
   0x3   : > { %s85_s17 = ssub.s32 %s1905_s14, %s1944_s16  ;;  %s88_s18 = sadd.s32 1, %s1901_s13 }
   0x4   : > { %p86_p0 = scmp.eq.s32.totalorder %s85_s17, 0  ;;  %p98_p1 = scmp.ne.s32.totalorder %s1901_s13, %s1897_s12 }
   0x5   : > { %p99_p2 = scmp.eq.s32.totalorder %s1942_s15, 1  ;;  %p1630_p3 = scmp.ge.s32.totalorder %s1905_s14, 1 }
   0x6   : > { %s1952_s19 = scalar_select %p86_p0, %s1901_s13, %s88_s18  }
   0x7   : > { %p1954_p4 = por %p99_p2, %p98_p1  ;;  %p138_p5 = scmp.lt.s32.totalorder %s1905_s14, 3 }
   0x9   : > { %p139_p6 = pnand %p1630_p3, %p138_p5 }
   0xb   : > { %142 = sbr.rel (%p139_p6) target bundleno = 503 (0x1f7), region = 32 }
  0x10   : > { %s1632_s21 = sshll.u32 %s1942_s15, 5  ;;  %vm207_vm0 = vcmask 261120   ;;  %v168_v0 = vld [vmem:[%s2651_s1] sm:$0x7f]  ;;  %s158_s30 = sand.u32 1, %s1897_s12  }
  0x11   : > { %p162_p7 = scmp.lt.s32.totalorder %s1632_s21, 63  ;;  %v1963_v1 = vsel %vm207_vm0, %v168_v0, 0  ;;  %s1631_s4 = sshll.u32 %s158_s30, 5 }
  0x12   : > { %v1966_v2 = vand.u32 4294901760, %v1963_v1  ;;  %s2546_s5 = scalar_lea.vmem [#allocation2], %s1631_s4  ;;  %s1647_s6 = sshll.u32 (%p1954_p4), %s1942_s15, 4 }
  0x13   : > { %s2806_s21 = smov (!%p162_p7, %s1632_s21), 63  ;;  %s1552_s9 = scalar_lea.vmem (%p1954_p4), %s2653_s3, %s1647_s6 }
  0x14   : > { %1714 = vmatprep.mubr.f32.mxu1 %v1966_v2  ;;  %s1633_s24 = sshll.u32 %s2806_s21, 3 }
  0x15   : > { %s1972_s27 = scalar_lea.vmem %s2650_s0, %s1633_s24 }
  0x16   : > { %v200_v3 = vld [vmem:[%s1972_s27 + $0xf8] sm:$0xff]  ;;  %v199_v5 = vld [vmem:[%s1972_s27 + $0xf0] sm:$0xff]  ;;  %v198_v10 = vld [vmem:[%s1972_s27 + $0xe8] sm:$0xff] }
  0x17   : > { %v184_v4 = vld [vmem:[%s1972_s27 + $0x78] sm:$0xff]  ;;  %v305_v6 = vsel %vm207_vm0, %v200_v3, 0  ;;  %v302_v8 = vsel %vm207_vm0, %v199_v5, 0  ;;  %v183_v9 = vld [vmem:[%s1972_s27 + $0x70] sm:$0xff]  ;;  %v182_v11 = vld [vmem:[%s1972_s27 + $0x68] sm:$0xff]  ;;  %v299_v19 = vsel %vm207_vm0, %v198_v10, 0 }
  0x18   : > { %v257_v7 = vsel %vm207_vm0, %v184_v4, 0  ;;  %v1983_v12 = vand.u32 4294901760, %v305_v6  ;;  %v1987_v14 = vand.u32 4294901760, %v302_v8  ;;  %v254_v15 = vsel %vm207_vm0, %v183_v9, 0  ;;  %v197_v16 = vld [vmem:[%s1972_s27 + $0xe0] sm:$0xff]  ;;  %v196_v22 = vld [vmem:[%s1972_s27 + $0xd8] sm:$0xff] }
  0x19   : > { %v1985_v13 = vand.u32 4294901760, %v257_v7  ;;  %v181_v17 = vld [vmem:[%s1972_s27 + $0x60] sm:$0xff]  ;;  %v1992_v18 = vand.u32 4294901760, %v254_v15  ;;  %v251_v20 = vsel %vm207_vm0, %v182_v11, 0  ;;  %v296_v21 = vsel %vm207_vm0, %v197_v16, 0  ;;  %v180_v30 = vld [vmem:[%s1972_s27 + $0x58] sm:$0xff] }
  0x1a   : > { %1648 = vmatprep.subr.mxu0 %v1983_v12  ;;  %v1999_v23 = vand.u32 4294901760, %v299_v19  ;;  %v2002_v24 = vsub.f32 %v305_v6, %v1983_v12  ;;  %v2004_v25 = vand.u32 4294901760, %v251_v20  ;;  %v2011_v27 = vsub.f32 %v302_v8, %v1987_v14  ;;  %v195_v39 = vld [vmem:[%s1972_s27 + $0xd0] sm:$0xff]  ;;  %v194_v53 = vld [vmem:[%s1972_s27 + $0xc8] sm:$0xff]  ;;  %v193_v62 = vld [vmem:[%s1972_s27 + $0xc0] sm:$0xff] }
  0x1b   : > { %v2007_v26 = vsub.f32 %v257_v7, %v1985_v13  ;;  %1649 = vmatpush3.xpose.msra.mxu0 %v1985_v13  ;;  %v248_v28 = vsel %vm207_vm0, %v181_v17, 0  ;;  %v2015_v29 = vsub.f32 %v254_v15, %v1992_v18  ;;  %v2021_v33 = vand.u32 4294901760, %v296_v21  ;;  %v179_v48 = vld [vmem:[%s1972_s27 + $0x50] sm:$0xff]  ;;  %v178_v61 = vld [vmem:[%s1972_s27 + $0x48] sm:$0xff]  ;;  %v177_v16 = vld [vmem:[%s1972_s27 + $0x40] sm:$0xff] }
  0x1c   : > { %1650 = vmatprep.subr.mxu0 %v1987_v14  ;;  %v2669_v31 = vand.u32 4294901760, %v2002_v24  ;;  %v293_v34 = vsel %vm207_vm0, %v196_v22, 0  ;;  %v2666_v35 = vand.u32 4294901760, %v2011_v27  ;;  %v2025_v36 = vand.u32 4294901760, %v248_v28  ;;  %v192_v22 = vld [vmem:[%s1972_s27 + $0xb8] sm:$0xff] }
  0x1d   : > { %v2668_v32 = vand.u32 4294901760, %v2007_v26  ;;  %v2665_v37 = vand.u32 4294901760, %v2015_v29  ;;  %v2029_v38 = vsub.f32 %v299_v19, %v1999_v23  ;;  %v245_v42 = vsel %vm207_vm0, %v180_v30, 0 }
  0x1e   : > { %v531_v40 = vsub.f32 %v2002_v24, %v2669_v31  ;;  %v2040_v43 = vsub.f32 %v251_v20, %v2004_v25  ;;  %v538_v44 = vsub.f32 %v2011_v27, %v2666_v35  ;;  %v2049_v46 = vand.u32 4294901760, %v293_v34 }
  0x1f   : > { %v419_v41 = vsub.f32 %v2007_v26, %v2668_v32  ;;  %1651 = vmatpush3.xpose.msra.mxu0 %v1992_v18  ;;  %v426_v45 = vsub.f32 %v2015_v29, %v2665_v37  ;;  %v2663_v47 = vand.u32 4294901760, %v2029_v38  ;;  %v290_v52 = vsel %vm207_vm0, %v195_v39, 0  ;;  %v172_v32 = vld [vmem:[%s1972_s27 + $0x18] sm:$0xff] }
  0x20   : > { %1652 = vmatprep.subr.mxu0 %v1999_v23  ;;  %v532_v49 = vand.u32 4294901760, %v531_v40  ;;  %v2662_v51 = vand.u32 4294901760, %v2040_v43  ;;  %v539_v54 = vand.u32 4294901760, %v538_v44  ;;  %v2060_v56 = vand.u32 4294901760, %v245_v42 }
  0x21   : > { %v420_v50 = vand.u32 4294901760, %v419_v41  ;;  %v545_v55 = vsub.f32 %v2029_v38, %v2663_v47  ;;  %v2066_v58 = vsub.f32 %v296_v21, %v2021_v33  ;;  %v242_v59 = vsel %vm207_vm0, %v179_v48, 0 }
  0x22   : > { %1682 = vmatprep.subr.mxu1 %v532_v49  ;;  %v433_v57 = vsub.f32 %v2040_v43, %v2662_v51  ;;  %v2070_v60 = vsub.f32 %v248_v28, %v2025_v36  ;;  %v427_v63 = vand.u32 4294901760, %v426_v45  ;;  %v2075_v0 = vand.u32 4294901760, %v290_v52  ;;  %v176_v49 = vld [vmem:[%s1972_s27 + $0x38] sm:$0xff]  ;;  %v173_v51 = vld [vmem:[%s1972_s27 + $0x20] sm:$0xff] }
  0x23   : > { %1653 = vmatpush3.xpose.msra.mxu0 %v2004_v25  ;;  %1683 = vmatpush3.xpose.msra.mxu1 %v420_v50  ;;  %v287_v3 = vsel %vm207_vm0, %v194_v53, 0  ;;  %v2079_v4 = vsub.f32 %v293_v34, %v2049_v46  ;;  %v546_v5 = vand.u32 4294901760, %v545_v55  ;;  %v2660_v6 = vand.u32 4294901760, %v2066_v58  ;;  %v191_v55 = vld [vmem:[%s1972_s27 + $0xb0] sm:$0xff] }
  0x24   : > { %1654 = vmatprep.subr.mxu0 %v2021_v33  ;;  %1684 = vmatprep.subr.mxu1 %v539_v54  ;;  %v2083_v7 = vand.u32 4294901760, %v242_v59  ;;  %v2659_v8 = vand.u32 4294901760, %v2070_v60  ;;  %v239_v10 = vsel %vm207_vm0, %v178_v61, 0  ;;  %v2089_v11 = vsub.f32 %v245_v42, %v2060_v56 }
  0x25   : > { %v2658_v9 = vand.u32 4294901760, %v2079_v4  ;;  %v284_v15 = vsel %vm207_vm0, %v193_v62, 0  ;;  %v434_v17 = vand.u32 4294901760, %v433_v57  ;;  %v552_v19 = vsub.f32 %v2066_v58, %v2660_v6 }
  0x26   : > { %v440_v20 = vsub.f32 %v2070_v60, %v2659_v8  ;;  %v2099_v21 = vand.u32 4294901760, %v287_v3  ;;  %v2106_v30 = vand.u32 4294901760, %v239_v10  ;;  %v2656_v34 = vand.u32 4294901760, %v2089_v11 }
  0x27   : > { %1655 = vmatpush3.xpose.msra.mxu0 %v2025_v36  ;;  %1685 = vmatpush3.xpose.msra.mxu1 %v427_v63  ;;  %v559_v28 = vsub.f32 %v2079_v4, %v2658_v9  ;;  %v2110_v39 = vsub.f32 %v290_v52, %v2075_v0  ;;  %v553_v40 = vand.u32 4294901760, %v552_v19  ;;  %v2113_v41 = vand.u32 4294901760, %v284_v15  ;;  %v175_v63 = vld [vmem:[%s1972_s27 + $0x30] sm:$0xff]  ;;  %v190_v19 = vld [vmem:[%s1972_s27 + $0xa8] sm:$0xff]  ;;  %v189_v9 = vld [vmem:[%s1972_s27 + $0xa0] sm:$0xff] }
  0x28   : > { %2717 = vst [vmem:[#allocation3_spill] sm:$0xff] %v2106_v30  ;;  %1656 = vmatprep.subr.mxu0 %v2049_v46  ;;  %1686 = vmatprep.subr.mxu1 %v546_v5  ;;  %v236_v42 = vsel %vm207_vm0, %v177_v16, 0  ;;  %v2117_v44 = vsub.f32 %v242_v59, %v2083_v7  ;;  %v281_v48 = vsel %vm207_vm0, %v192_v22, 0  ;;  %v441_v50 = vand.u32 4294901760, %v440_v20 }
  0x29   : > { %2718 = vst [vmem:[#allocation4_spill] sm:$0xff] %v2113_v41  ;;  %v2655_v45 = vand.u32 4294901760, %v2110_v39  ;;  %v447_v52 = vsub.f32 %v2089_v11, %v2656_v34  ;;  %v2127_v54 = vsub.f32 %v287_v3, %v2099_v21  ;;  %v560_v57 = vand.u32 4294901760, %v559_v28  ;;  %v174_v34 = vld [vmem:[%s1972_s27 + $0x28] sm:$0xff] }
  0x2a   : > { %v2654_v53 = vand.u32 4294901760, %v2117_v44  ;;  %v2131_v59 = vand.u32 4294901760, %v236_v42  ;;  %v2133_v61 = vand.u32 4294901760, %v281_v48  ;;  %v2136_v62 = vsub.f32 %v239_v10, %v2106_v30 }
  0x2b   : > { %1657 = vmatpush3.xpose.msra.mxu0 %v2060_v56  ;;  %1687 = vmatpush3.xpose.msra.mxu1 %v434_v17  ;;  %v566_v3 = vsub.f32 %v2110_v39, %v2655_v45  ;;  %v2657_v5 = vand.u32 4294901760, %v2127_v54  ;;  %v233_v16 = vsel %vm207_vm0, %v176_v49, 0  ;;  %v2146_v17 = vsub.f32 %v284_v15, %v2113_v41 }
  0x2c   : > { %2719 = vst [vmem:[#allocation5_spill] sm:$0xff] %v2131_v59  ;;  %2720 = vst [vmem:[#allocation6_spill] sm:$0xff] %v2133_v61  ;;  %1658 = vmatprep.subr.mxu0 %v2075_v0  ;;  %1688 = vmatprep.subr.mxu1 %v553_v40  ;;  %v278_v20 = vsel %vm207_vm0, %v191_v55, 0  ;;  %v448_v10 = vand.u32 4294901760, %v447_v52  ;;  %v454_v22 = vsub.f32 %v2117_v44, %v2654_v53  ;;  %v2661_v28 = vand.u32 4294901760, %v2136_v62 }
  0x2d   : > { %v230_v40 = vsel %vm207_vm0, %v175_v63, 0  ;;  %v573_v15 = vsub.f32 %v2127_v54, %v2657_v5  ;;  %v2159_v49 = vand.u32 4294901760, %v233_v16  ;;  %v2162_v52 = vsub.f32 %v236_v42, %v2131_v59 }
  0x2e   : > { %v275_v55 = vsel %vm207_vm0, %v190_v19, 0  ;;  %v567_v53 = vand.u32 4294901760, %v566_v3  ;;  %v2166_v45 = vand.u32 4294901760, %v278_v20  ;;  %v2664_v63 = vand.u32 4294901760, %v2146_v17 }
  0x2f   : > { %1659 = vmatpush3.xpose.msra.mxu0 %v2083_v7  ;;  %1689 = vmatpush3.xpose.msra.mxu1 %v441_v50  ;;  %2721 = vst [vmem:[#allocation7_spill] sm:$0xff] %v2159_v49  ;;  %v2170_v50 = vsub.f32 %v281_v48, %v2133_v61  ;;  %v2173_v5 = vand.u32 4294901760, %v230_v40  ;;  %v455_v42 = vand.u32 4294901760, %v454_v22  ;;  %v461_v19 = vsub.f32 %v2136_v62, %v2661_v28 }
  0x30   : > { %1660 = vmatprep.subr.mxu0 %v2099_v21  ;;  %1690 = vmatprep.subr.mxu1 %v560_v57  ;;  %2722 = vst [vmem:[#allocation8_spill] sm:$0xff] %v2166_v45  ;;  %v2179_v8 = vand.u32 4294901760, %v275_v55  ;;  %v574_v57 = vand.u32 4294901760, %v573_v15  ;;  %v2667_v48 = vand.u32 4294901760, %v2162_v52  ;;  %v227_v3 = vsel %vm207_vm0, %v174_v34, 0 }
  0x31   : > { %2723 = vst [vmem:[#allocation9_spill] sm:$0xff] %v2173_v5  ;;  %v2185_v6 = vsub.f32 %v233_v16, %v2159_v49  ;;  %v580_v22 = vsub.f32 %v2146_v17, %v2664_v63  ;;  %v2670_v28 = vand.u32 4294901760, %v2170_v50  ;;  %v2194_v15 = vsub.f32 %v278_v20, %v2166_v45  ;;  %v188_v63 = vld [vmem:[%s1972_s27 + $0x98] sm:$0xff] }
  0x32   : > { %2724 = vst [vmem:[#allocation10_spill] sm:$0xff] %v2179_v8  ;;  %v2198_v34 = vsub.f32 %v230_v40, %v2173_v5  ;;  %v2202_v16 = vsub.f32 %v1963_v1, %v1966_v2  ;;  %v2204_v47 = vand.u32 4294901760, %v227_v3  ;;  %v2208_v37 = vsub.f32 %v275_v55, %v2179_v8 }
  0x33   : > { %1661 = vmatpush3.xpose.msra.mxu0 %v2106_v30  ;;  %1691 = vmatpush3.xpose.msra.mxu1 %v448_v10  ;;  %2725 = vst [vmem:[#allocation11_spill] sm:$0xff] %v2185_v6  ;;  %v272_v10 = vsel %vm207_vm0, %v189_v9, 0  ;;  %2726 = vst [vmem:[#allocation12_spill] sm:$0xff] %v2194_v15  ;;  %v468_v9 = vsub.f32 %v2162_v52, %v2667_v48  ;;  %v2677_v20 = vand.u32 4294901760, %v2185_v6  ;;  %v224_v40 = vsel %vm207_vm0, %v173_v51, 0 }
  0x34   : > { %1662 = vmatprep.subr.mxu0 %v2113_v41  ;;  %1692 = vmatprep.subr.mxu1 %v567_v53  ;;  %2727 = vst [vmem:[#allocation13_spill] sm:$0xff] %v2198_v34  ;;  %v462_v53 = vand.u32 4294901760, %v461_v19  ;;  %2728 = vst [vmem:[#allocation14_spill] sm:$0xff] %v2204_v47  ;;  %v2215_v1 = vand.u32 4294901760, %v272_v10  ;;  %v581_v19 = vand.u32 4294901760, %v580_v22  ;;  %v587_v55 = vsub.f32 %v2170_v50, %v2670_v28  ;;  %v187_v28 = vld [vmem:[%s1972_s27 + $0x90] sm:$0xff] }
  0x35   : > { %2729 = vst [vmem:[#allocation15_spill] sm:$0xff] %v2208_v37  ;;  %v269_v48 = vsel %vm207_vm0, %v188_v63, 0  ;;  %v2227_v31 = vand.u32 4294901760, %v2202_v16  ;;  %v2229_v51 = vand.u32 4294901760, %v224_v40  ;;  %v2233_v22 = vsub.f32 %v227_v3, %v2204_v47  ;;  %v186_v41 = vld [vmem:[%s1972_s27 + $0x88] sm:$0xff] }
  0x36   : > { %v469_v35 = vand.u32 4294901760, %v468_v9  ;;  %v475_v63 = vsub.f32 %v2185_v6, %v2677_v20  ;;  %v2733_v3 = vand.u32 4294901760, %v2194_v15  ;;  %v171_v9 = vld [vmem:[%s1972_s27 + $0x10] sm:$0xff] }
  0x37   : > { %1663 = vmatpush3.xpose.msra.mxu0 %v2131_v59  ;;  %1693 = vmatpush3.xpose.msra.mxu1 %v455_v42  ;;  %2730 = vst [vmem:[#allocation16_spill] sm:$0xff] %v2229_v51  ;;  %2731 = vst [vmem:[#allocation17_spill] sm:$0xff] %v2233_v22  ;;  %v2241_v42 = vsub.f32 %v272_v10, %v2215_v1  ;;  %v2247_v59 = vand.u32 4294901760, %v269_v48  ;;  %v266_v10 = vsel %vm207_vm0, %v187_v28, 0 }
  0x38   : > { %1664 = vmatprep.subr.mxu0 %v2133_v61  ;;  %1694 = vmatprep.subr.mxu1 %v574_v57  ;;  %v588_v57 = vand.u32 4294901760, %v587_v55  ;;  %v594_v61 = vsub.f32 %v2194_v15, %v2733_v3  ;;  %v2736_v55 = vand.u32 4294901760, %v2208_v37  ;;  %v218_v15 = vsel %vm207_vm0, %v171_v9, 0 }
  0x39   : > { %2732 = vst [vmem:[#allocation18_spill] sm:$0xff] %v2241_v42  ;;  %2734 = vst [vmem:[#allocation19_spill] sm:$0xff] %v2247_v59 }
  0x3a   : > { %v601_v3 = vsub.f32 %v2208_v37, %v2736_v55  ;;  %v595_v55 = vand.u32 4294901760, %v594_v61  ;;  %v2271_v37 = vand.u32 4294901760, %v266_v10 }
  0x3b   : > { %1665 = vmatpush3.xpose.msra.mxu0 %v2159_v49  ;;  %1695 = vmatpush3.xpose.msra.mxu1 %v462_v53  ;;  %v221_v53 = vsel %vm207_vm0, %v172_v32, 0  ;;  %v2735_v49 = vand.u32 4294901760, %v2198_v34  ;;  %v2263_v32 = vsub.f32 %v224_v40, %v2229_v51  ;;  %v2275_v40 = vsub.f32 %v269_v48, %v2247_v59 }
  0x3c   : > { %1666 = vmatprep.subr.mxu0 %v2166_v45  ;;  %1696 = vmatprep.subr.mxu1 %v581_v19  ;;  %v407_v19 = vsub.f32 %v2202_v16, %v2227_v31  ;;  %v2266_v28 = vand.u32 4294901760, %v221_v53  ;;  %2738 = vst [vmem:[#allocation21_spill] sm:$0xff] %v2271_v37  ;;  %v263_v45 = vsel %vm207_vm0, %v186_v41, 0  ;;  %v602_v6 = vand.u32 4294901760, %v601_v3 }
  0x3d   : > { %v482_v20 = vsub.f32 %v2198_v34, %v2735_v49  ;;  %2737 = vst [vmem:[#allocation20_spill] sm:$0xff] %v2263_v32  ;;  %v476_v49 = vand.u32 4294901760, %v475_v63  ;;  %v185_v63 = vld [vmem:[%s1972_s27 + $0x80] sm:$0xff]  ;;  %v2739_v34 = vand.u32 4294901760, %v2233_v22  ;;  %v2740_v41 = vand.u32 4294901760, %v2241_v42 }
  0x3e   : > { %v2279_v30 = vand.u32 4294901760, %v407_v19  ;;  %v2295_v3 = vsub.f32 %v221_v53, %v2266_v28  ;;  %v260_v61 = vsel %vm207_vm0, %v185_v63, 0 }
  0x3f   : > { %1667 = vmatpush3.xpose.msra.mxu0 %v2173_v5  ;;  %1697 = vmatpush3.xpose.msra.mxu1 %v469_v35  ;;  %v170_v5 = vld [vmem:[%s1972_s27 + $0x8] sm:$0xff]  ;;  %v483_v35 = vand.u32 4294901760, %v482_v20  ;;  %v489_v9 = vsub.f32 %v2233_v22, %v2739_v34  ;;  %v608_v48 = vsub.f32 %v2241_v42, %v2740_v41  ;;  %v2291_v20 = vand.u32 4294901760, %v263_v45  ;;  %v201_v34 = vld [vmem:[%s2652_s2] sm:$0x7f] }
  0x40   : > { %1668 = vmatprep.subr.mxu0 %v2179_v8  ;;  %1698 = vmatprep.subr.mxu1 %v588_v57  ;;  %v2284_v57 = vand.u32 4294901760, %v218_v15  ;;  %v215_v19 = vsel %vm207_vm0, %v170_v5, 0  ;;  %v2304_v41 = vsub.f32 %v266_v10, %v2271_v37  ;;  %v1907_v5 = vmov 0  }
  0x41   : > { %2741 = vst [vmem:[#allocation22_spill] sm:$0xff] %v2291_v20  ;;  %1680 = vmatprep.mubr.f32.mxu0 %v2279_v30  ;;  %1878 = vset.pattern.permute.xlu0 %v1907_v5  ;;  %v490_v53 = vand.u32 4294901760, %v489_v9  ;;  %v2742_v8 = vand.u32 4294901760, %v2263_v32  ;;  %v2311_v22 = vand.u32 4294901760, %v215_v19  ;;  %v2704_v10 = vand.u32 4294901760, %v2295_v3 }
  0x42   : > { %204 = vperm.xlu0 %1878, %v201_v34   ;;  %v2315_v63 = vand.u32 4294901760, %v260_v61  ;;  %v2743_v9 = vand.u32 4294901760, %v2275_v40  ;;  %v2705_v34 = vand.u32 4294901760, %v2304_v41 }
  0x43   : > { %1669 = vmatpush3.xpose.msra.mxu0 %v2204_v47  ;;  %1699 = vmatpush3.xpose.msra.mxu1 %v476_v49  ;;  %v169_v47 = vld [vmem:[%s1972_s27] sm:$0xff]  ;;  %v496_v42 = vsub.f32 %v2263_v32, %v2742_v8  ;;  %v2318_v49 = vsub.f32 %v218_v15, %v2284_v57  ;;  %v503_v15 = vsub.f32 %v2295_v3, %v2704_v10 }
  0x44   : > { %1670 = vmatprep.subr.mxu0 %v2215_v1  ;;  %1700 = vmatprep.subr.mxu1 %v595_v55  ;;  %v609_v55 = vand.u32 4294901760, %v608_v48  ;;  %v615_v8 = vsub.f32 %v2275_v40, %v2743_v9  ;;  %v212_v5 = vsel %vm207_vm0, %v169_v47, 0  ;;  %v2337_v9 = vsub.f32 %v215_v19, %v2311_v22 }
  0x45   : > { %v497_v48 = vand.u32 4294901760, %v496_v42  ;;  %v504_v10 = vand.u32 4294901760, %v503_v15 }
  0x46   : > { %2744 = vst [vmem:[#allocation23_spill] sm:$0xff] %v2337_v9  ;;  %v616_v47 = vand.u32 4294901760, %v615_v8 }
  0x47   : > { %1671 = vmatpush3.xpose.msra.mxu0 %v2229_v51  ;;  %1701 = vmatpush3.xpose.msra.mxu1 %v483_v35  ;;  %v2327_v35 = vsub.f32 %v263_v45, %v2291_v20  ;;  %v622_v45 = vsub.f32 %v2304_v41, %v2705_v34 }
  0x48   : > { %1672 = vmatprep.subr.mxu0 %v2247_v59  ;;  %1702 = vmatprep.subr.mxu1 %v602_v6  ;;  %v2333_v6 = vand.u32 4294901760, %v212_v5  ;;  %v2706_v59 = vand.u32 4294901760, %v2318_v49 }
  0x49   : > { %v2707_v42 = vand.u32 4294901760, %v2327_v35  ;;  %v623_v34 = vand.u32 4294901760, %v622_v45 }
  0x4a   : > { %v510_v19 = vsub.f32 %v2318_v49, %v2706_v59  ;;  %v2353_v8 = vsub.f32 %v212_v5, %v2333_v6 }
  0x4b   : > { %1673 = vmatpush3.xpose.msra.mxu0 %v2266_v28  ;;  %1703 = vmatpush3.xpose.msra.mxu1 %v490_v53  ;;  %v2345_v53 = vsub.f32 %v260_v61, %v2315_v63  ;;  %v629_v61 = vsub.f32 %v2327_v35, %v2707_v42 }
  0x4c   : > { %1674 = vmatprep.subr.mxu0 %v2271_v37  ;;  %1704 = vmatprep.subr.mxu1 %v609_v55  ;;  %v2710_v55 = vand.u32 4294901760, %v2337_v9  ;;  %v511_v15 = vand.u32 4294901760, %v510_v19  ;;  %v2708_v5 = vand.u32 4294901760, %v2353_v8 }
  0x4e   : > { %v517_v59 = vsub.f32 %v2337_v9, %v2710_v55  ;;  %v2757_v55 = vld [vmem:[#allocation9_spill] sm:$0xff] }
  0x4f   : > { %1675 = vmatpush3.xpose.msra.mxu0 %v2284_v57  ;;  %1705 = vmatpush3.xpose.msra.mxu1 %v497_v48  ;;  %v2709_v48 = vand.u32 4294901760, %v2345_v53 }
  0x50   : > { %1676 = vmatprep.subr.mxu0 %v2291_v20  ;;  %1706 = vmatprep.subr.mxu1 %v616_v47  ;;  %v630_v47 = vand.u32 4294901760, %v629_v61  ;;  %v518_v42 = vand.u32 4294901760, %v517_v59  ;;  %v2746_v59 = vld [vmem:[#allocation3_spill] sm:$0xff]  ;;  %v2748_v61 = vld [vmem:[#allocation4_spill] sm:$0xff] }
  0x51   : > { %v636_v45 = vsub.f32 %v2345_v53, %v2709_v48  ;;  %v2756_v48 = vld [vmem:[#allocation8_spill] sm:$0xff] }
  0x53   : > { %1677 = vmatpush3.xpose.msra.mxu0 %v2311_v22  ;;  %1707 = vmatpush3.xpose.msra.mxu1 %v504_v10  ;;  %v524_v10 = vsub.f32 %v2353_v8, %v2708_v5  ;;  %v637_v19 = vand.u32 4294901760, %v636_v45  ;;  %v2751_v45 = vld [vmem:[#allocation15_spill] sm:$0xff]  ;;  %v2755_v5 = vld [vmem:[#allocation18_spill] sm:$0xff] }
  0x54   : > { %1678 = vmatprep.subr.mxu0 %v2315_v63  ;;  %1708 = vmatprep.subr.mxu1 %v623_v34 }
  0x55   : > { %v525_v34 = vand.u32 4294901760, %v524_v10  ;;  %v2752_v10 = vld [vmem:[#allocation6_spill] sm:$0xff] }
  0x57   : > { %1679 = vmatpush3.xpose.msra.mxu0 %v2333_v6  ;;  %1709 = vmatpush3.xpose.msra.mxu1 %v511_v15  ;;  %v2749_v15 = vld [vmem:[#allocation13_spill] sm:$0xff] }
  0x58   : > { %1710 = vmatprep.subr.mxu1 %v630_v47  ;;  %1716 = vmatprep.subr.mxu0 %v2002_v24  ;;  %v2750_v47 = vld [vmem:[#allocation5_spill] sm:$0xff] }
  0x5a   : > { %1681 = vmatmul.mubr.f32.vlgmr.msra.gmra.mxu0 %v2279_v30  ;;  %v2745_v30 = vld [vmem:[#allocation11_spill] sm:$0xff] }
  0x5b   : > { %1711 = vmatpush3.xpose.msra.mxu1 %v518_v42  ;;  %1717 = vmatpush3.xpose.msra.mxu0 %v2007_v26  ;;  %v2747_v42 = vld [vmem:[#allocation12_spill] sm:$0xff] }
  0x5c   : > { %1712 = vmatprep.subr.mxu1 %v637_v19  ;;  %1718 = vmatprep.subr.mxu0 %v2011_v27  ;;  %v2753_v19 = vld [vmem:[#allocation17_spill] sm:$0xff] }
  0x5d   : > { %1748 = vmatprep.mubr.f32.mxu0 %v2202_v16 }
  0x5f   : > { %1713 = vmatpush3.xpose.msra.mxu1 %v525_v34  ;;  %1719 = vmatpush3.xpose.msra.mxu0 %v2015_v29  ;;  %v2754_v34 = vld [vmem:[#allocation7_spill] sm:$0xff] }
  0x60   : > { %1720 = vmatprep.subr.mxu0 %v2029_v38  ;;  %1750 = vmatprep.subr.mxu1 %v1983_v12 }
  0x62   : > { %1715 = vmatmul.mubr.f32.vlgmr.msra.gmra.mxu1 %v1966_v2 }
  0x63   : > { %1721 = vmatpush3.xpose.msra.mxu0 %v2040_v43  ;;  %1751 = vmatpush3.xpose.msra.mxu1 %v1985_v13 }
  0x64   : > { %1722 = vmatprep.subr.mxu0 %v2066_v58  ;;  %1752 = vmatprep.subr.mxu1 %v1987_v14 }
  0x65   : > { %1782 = vmatprep.mubr.f32.mxu1 %v2227_v31 }
  0x67   : > { %1723 = vmatpush3.xpose.msra.mxu0 %v2070_v60  ;;  %1753 = vmatpush3.xpose.msra.mxu1 %v1992_v18 }
  0x68   : > { %1724 = vmatprep.subr.mxu0 %v2079_v4  ;;  %1754 = vmatprep.subr.mxu1 %v1999_v23 }
  0x6b   : > { %1725 = vmatpush3.xpose.msra.mxu0 %v2089_v11  ;;  %1755 = vmatpush3.xpose.msra.mxu1 %v2004_v25 }
  0x6c   : > { %1726 = vmatprep.subr.mxu0 %v2110_v39  ;;  %1756 = vmatprep.subr.mxu1 %v2021_v33 }
  0x6f   : > { %1727 = vmatpush3.xpose.msra.mxu0 %v2117_v44  ;;  %1757 = vmatpush3.xpose.msra.mxu1 %v2025_v36 }
  0x70   : > { %1728 = vmatprep.subr.mxu0 %v2127_v54  ;;  %1758 = vmatprep.subr.mxu1 %v2049_v46 }
  0x73   : > { %1729 = vmatpush3.xpose.msra.mxu0 %v2136_v62  ;;  %1759 = vmatpush3.xpose.msra.mxu1 %v2060_v56 }
  0x74   : > { %1730 = vmatprep.subr.mxu0 %v2146_v17  ;;  %1760 = vmatprep.subr.mxu1 %v2075_v0 }
  0x77   : > { %1731 = vmatpush3.xpose.msra.mxu0 %v2162_v52  ;;  %1761 = vmatpush3.xpose.msra.mxu1 %v2083_v7 }
  0x78   : > { %1732 = vmatprep.subr.mxu0 %v2170_v50  ;;  %1762 = vmatprep.subr.mxu1 %v2099_v21 }
  0x7b   : > { %1733 = vmatpush3.xpose.msra.mxu0 %v2745_v30  ;;  %1763 = vmatpush3.xpose.msra.mxu1 %v2746_v59 }
  0x7c   : > { %1734 = vmatprep.subr.mxu0 %v2747_v42  ;;  %1764 = vmatprep.subr.mxu1 %v2748_v61 }
  0x7f   : > { %1735 = vmatpush3.xpose.msra.mxu0 %v2749_v15  ;;  %1765 = vmatpush3.xpose.msra.mxu1 %v2750_v47  ;;  %v2758_v15 = vld [vmem:[#allocation10_spill] sm:$0xff] }
  0x80   : > { %1736 = vmatprep.subr.mxu0 %v2751_v45  ;;  %1766 = vmatprep.subr.mxu1 %v2752_v10  ;;  %v2759_v45 = vld [vmem:[#allocation14_spill] sm:$0xff] }
  0x83   : > { %1737 = vmatpush3.xpose.msra.mxu0 %v2753_v19  ;;  %1767 = vmatpush3.xpose.msra.mxu1 %v2754_v34 }
  0x84   : > { %1738 = vmatprep.subr.mxu0 %v2755_v5  ;;  %1768 = vmatprep.subr.mxu1 %v2756_v48 }
  0x87   : > { %1739 = vmatpush3.xpose.msra.mxu0 %v2263_v32  ;;  %1769 = vmatpush3.xpose.msra.mxu1 %v2757_v55  ;;  %v2760_v32 = vld [vmem:[#allocation19_spill] sm:$0xff] }
  0x88   : > { %1740 = vmatprep.subr.mxu0 %v2275_v40  ;;  %1770 = vmatprep.subr.mxu1 %v2758_v15 }
  0x8b   : > { %1741 = vmatpush3.xpose.msra.mxu0 %v2295_v3  ;;  %1771 = vmatpush3.xpose.msra.mxu1 %v2759_v45 }
  0x8c   : > { %1742 = vmatprep.subr.mxu0 %v2304_v41  ;;  %1772 = vmatprep.subr.mxu1 %v2215_v1 }
  0x8f   : > { %1743 = vmatpush3.xpose.msra.mxu0 %v2318_v49  ;;  %1773 = vmatpush3.xpose.msra.mxu1 %v2229_v51  ;;  %v2761_v51 = vand.u32 4294901760, %v2002_v24  ;;  %v2765_v24 = vand.u32 4294901760, %v2029_v38  ;;  %v2779_v38 = vand.u32 4294901760, %v2747_v42 }
  0x90   : > { %1744 = vmatprep.subr.mxu0 %v2327_v35  ;;  %1774 = vmatprep.subr.mxu1 %v2760_v32 }
  0x93   : > { %1745 = vmatpush3.xpose.msra.mxu0 %v2337_v9  ;;  %1775 = vmatpush3.xpose.msra.mxu1 %v2266_v28  ;;  %v2762_v9 = vand.u32 4294901760, %v2007_v26  ;;  %v2766_v26 = vand.u32 4294901760, %v2040_v43  ;;  %v2780_v43 = vld [vmem:[#allocation13_spill] sm:$0xff] }
  0x94   : > { %1746 = vmatprep.subr.mxu0 %v2345_v53  ;;  %1776 = vmatprep.subr.mxu1 %v2271_v37  ;;  %v2763_v37 = vand.u32 4294901760, %v2011_v27  ;;  %v2767_v27 = vand.u32 4294901760, %v2066_v58 }
  0x97   : > { %1747 = vmatpush3.xpose.msra.mxu0 %v2353_v8  ;;  %1777 = vmatpush3.xpose.msra.mxu1 %v2284_v57 }
  0x98   : > { %1778 = vmatprep.subr.mxu1 %v2291_v20  ;;  %1784 = vmatprep.subr.mxu0 %v2761_v51  ;;  %v2764_v20 = vand.u32 4294901760, %v2015_v29  ;;  %v2768_v29 = vand.u32 4294901760, %v2070_v60  ;;  %v2784_v60 = vand.u32 4294901760, %v2753_v19  ;;  %v2799_v51 = vld [vmem:[#allocation22_spill] sm:$0xff] }
  0x9a   : > { %1749 = vmatmul.mubr.f32.vlgmr.msra.gmra.mxu0 %v2202_v16  ;;  %v2797_v16 = vld [vmem:[#allocation21_spill] sm:$0xff] }
  0x9b   : > { %1779 = vmatpush3.xpose.msra.mxu1 %v2311_v22  ;;  %1785 = vmatpush3.xpose.msra.mxu0 %v2762_v9 }
  0x9c   : > { %1780 = vmatprep.subr.mxu1 %v2315_v63  ;;  %1786 = vmatprep.subr.mxu0 %v2763_v37  ;;  %v2778_v37 = vand.u32 4294901760, %v2745_v30 }
  0x9d   : > { %1816 = vmatprep.mubr.f32.mxu0 %v1966_v2 }
  0x9f   : > { %1781 = vmatpush3.xpose.msra.mxu1 %v2333_v6  ;;  %1787 = vmatpush3.xpose.msra.mxu0 %v2764_v20 }
  0xa0   : > { %1788 = vmatprep.subr.mxu0 %v2765_v24  ;;  %1818 = vmatprep.subr.mxu1 %v1983_v12  ;;  %v2769_v12 = vand.u32 4294901760, %v2079_v4  ;;  %v2786_v4 = vld [vmem:[#allocation20_spill] sm:$0xff] }
  0xa2   : > { %1783 = vmatmul.mubr.f32.vlgmr.msra.gmra.mxu1 %v2227_v31  ;;  %v2770_v31 = vand.u32 4294901760, %v2089_v11  ;;  %v2788_v11 = vand.u32 4294901760, %v2275_v40 }
  0xa3   : > { %1789 = vmatpush3.xpose.msra.mxu0 %v2766_v26  ;;  %1819 = vmatpush3.xpose.msra.mxu1 %v1985_v13  ;;  %v2771_v13 = vand.u32 4294901760, %v2110_v39  ;;  %v2790_v39 = vand.u32 4294901760, %v2304_v41 }
  0xa4   : > { %1790 = vmatprep.subr.mxu0 %v2767_v27  ;;  %1820 = vmatprep.subr.mxu1 %v1987_v14  ;;  %v2772_v14 = vand.u32 4294901760, %v2117_v44  ;;  %v2791_v44 = vand.u32 4294901760, %v2318_v49 }
  0xa5   : > { %1850 = vmatprep.mubr.f32.mxu1 %v1966_v2 }
  0xa7   : > { %1791 = vmatpush3.xpose.msra.mxu0 %v2768_v29  ;;  %1821 = vmatpush3.xpose.msra.mxu1 %v1992_v18  ;;  %v2773_v18 = vand.u32 4294901760, %v2127_v54  ;;  %v2792_v54 = vld [vmem:[#allocation16_spill] sm:$0xff] }
  0xa8   : > { %1792 = vmatprep.subr.mxu0 %v2769_v12  ;;  %1822 = vmatprep.subr.mxu1 %v1999_v23  ;;  %v2774_v23 = vand.u32 4294901760, %v2136_v62  ;;  %v2793_v62 = vand.u32 4294901760, %v2327_v35 }
  0xab   : > { %1793 = vmatpush3.xpose.msra.mxu0 %v2770_v31  ;;  %1823 = vmatpush3.xpose.msra.mxu1 %v2004_v25  ;;  %v2775_v25 = vand.u32 4294901760, %v2146_v17  ;;  %v2794_v17 = vld [vmem:[#allocation23_spill] sm:$0xff] }
  0xac   : > { %1794 = vmatprep.subr.mxu0 %v2771_v13  ;;  %1824 = vmatprep.subr.mxu1 %v2021_v33  ;;  %v2776_v33 = vand.u32 4294901760, %v2162_v52  ;;  %v2795_v52 = vand.u32 4294901760, %v2794_v17 }
  0xaf   : > { %1795 = vmatpush3.xpose.msra.mxu0 %v2772_v14  ;;  %1825 = vmatpush3.xpose.msra.mxu1 %v2025_v36  ;;  %v2777_v36 = vand.u32 4294901760, %v2170_v50  ;;  %v2796_v50 = vand.u32 4294901760, %v2345_v53 }
  0xb0   : > { %1796 = vmatprep.subr.mxu0 %v2773_v18  ;;  %1826 = vmatprep.subr.mxu1 %v2049_v46  ;;  %v2781_v46 = vand.u32 4294901760, %v2780_v43  ;;  %v1908_v43 = vmov 1966171168  }
  0xb3   : > { %1797 = vmatpush3.xpose.msra.mxu0 %v2774_v23  ;;  %1827 = vmatpush3.xpose.msra.mxu1 %v2060_v56  ;;  %v2782_v56 = vld [vmem:[#allocation15_spill] sm:$0xff] }
  0xb4   : > { %1798 = vmatprep.subr.mxu0 %v2775_v25  ;;  %1828 = vmatprep.subr.mxu1 %v2075_v0  ;;  %v2783_v58 = vand.u32 4294901760, %v2782_v56  ;;  %v2785_v0 = vand.u32 4294901760, %v2755_v5  ;;  %v1232_v56 = vlaneseq }
  0xb6   : > { %v1233_v17 = vshrl.u32 %v1232_v56, 7  ;;  %vm2577_vm1 = vcmp.lt.s32.totalorder %v1232_v56, 256 }
  0xb7   : > { %1799 = vmatpush3.xpose.msra.mxu0 %v2776_v33  ;;  %1829 = vmatpush3.xpose.msra.mxu1 %v2083_v7  ;;  %v2787_v7 = vand.u32 4294901760, %v2786_v4 }
  0xb8   : > { %1800 = vmatprep.subr.mxu0 %v2777_v36  ;;  %1830 = vmatprep.subr.mxu1 %v2099_v21  ;;  %v2789_v21 = vand.u32 4294901760, %v2295_v3 }
  0xbb   : > { %1801 = vmatpush3.xpose.msra.mxu0 %v2778_v37  ;;  %1831 = vmatpush3.xpose.msra.mxu1 %v2746_v59 }
  0xbc   : > { %1802 = vmatprep.subr.mxu0 %v2779_v38  ;;  %1832 = vmatprep.subr.mxu1 %v2748_v61 }
  0xbf   : > { %1803 = vmatpush3.xpose.msra.mxu0 %v2781_v46  ;;  %1833 = vmatpush3.xpose.msra.mxu1 %v2750_v47  ;;  %v1230_v46 = vunpack.c.l.s4 %v1908_v43 }
  0xc0   : > { %1804 = vmatprep.subr.mxu0 %v2783_v58  ;;  %1834 = vmatprep.subr.mxu1 %v2752_v10 }
  0xc3   : > { %1805 = vmatpush3.xpose.msra.mxu0 %v2784_v60  ;;  %1835 = vmatpush3.xpose.msra.mxu1 %v2754_v34 }
  0xc4   : > { %1806 = vmatprep.subr.mxu0 %v2785_v0  ;;  %1836 = vmatprep.subr.mxu1 %v2756_v48 }
  0xc7   : > { %1807 = vmatpush3.xpose.msra.mxu0 %v2787_v7  ;;  %1837 = vmatpush3.xpose.msra.mxu1 %v2757_v55 }
  0xc8   : > { %1808 = vmatprep.subr.mxu0 %v2788_v11  ;;  %1838 = vmatprep.subr.mxu1 %v2758_v15 }
  0xcb   : > { %1809 = vmatpush3.xpose.msra.mxu0 %v2789_v21  ;;  %1839 = vmatpush3.xpose.msra.mxu1 %v2759_v45 }
  0xcc   : > { %1810 = vmatprep.subr.mxu0 %v2790_v39  ;;  %1840 = vmatprep.subr.mxu1 %v2215_v1  ;;  %v2798_v1 = vand.u32 4294901760, %v2353_v8 }
  0xcf   : > { %1811 = vmatpush3.xpose.msra.mxu0 %v2791_v44  ;;  %1841 = vmatpush3.xpose.msra.mxu1 %v2792_v54 }
  0xd0   : > { %1812 = vmatprep.subr.mxu0 %v2793_v62  ;;  %1842 = vmatprep.subr.mxu1 %v2760_v32  ;;  %v1231_v62 = vunpack.c.0.s8 %v1230_v46 }
  0xd3   : > { %1813 = vmatpush3.xpose.msra.mxu0 %v2795_v52  ;;  %1843 = vmatpush3.xpose.msra.mxu1 %v2266_v28  ;;  %v205_v28 = vpop.permute.xlu0 %204 }
  0xd4   : > { %1814 = vmatprep.subr.mxu0 %v2796_v50  ;;  %1844 = vmatprep.subr.mxu1 %v2797_v16 }
  0xd7   : > { %1815 = vmatpush3.xpose.msra.mxu0 %v2798_v1  ;;  %1845 = vmatpush3.xpose.msra.mxu1 %v2284_v57 }
  0xd8   : > { %1846 = vmatprep.subr.mxu1 %v2799_v51 }
  0xda   : > { %1817 = vmatmul.mubr.f32.vlgmr.msra.gmra.mxu0 %v1966_v2 }
  0xdb   : > { %1847 = vmatpush3.xpose.msra.mxu1 %v2311_v22 }
  0xdc   : > { %1848 = vmatprep.subr.mxu1 %v2315_v63 }
  0xdf   : > { %1849 = vmatpush3.xpose.msra.mxu1 %v2333_v6 }
  0xe2   : > { %1851 = vmatmul.mubr.f32.vlgmr.msra.gmra.mxu1 %v1966_v2 }
 0x11a   : > { %v410_v32 = vpop.f32.mrf.mxu0 }
 0x11b   : > { %v411_v49 = vadd.f32 %v410_v32, %v205_v28 }
 0x11c   : > { %v412_v40 = vpop.f32.mrf.mxu0 }
 0x11d   : > { %v413_v41 = vadd.f32 %v412_v40, %v205_v28 }
 0x122   : > { %v642_v20 = vpop.f32.mrf.mxu1 }
 0x123   : > { %v643_v53 = vadd.f32 %v642_v20, %v411_v49 }
 0x124   : > { %v644_v57 = vpop.f32.mrf.mxu1 }
 0x125   : > { %v645_v22 = vadd.f32 %v644_v57, %v413_v41 }
 0x15a   : > { %v779_v3 = vpop.f32.mrf.mxu0 }
 0x15b   : > { %v780_v8 = vadd.f32 %v779_v3, %v643_v53 }
 0x15c   : > { %v781_v35 = vpop.f32.mrf.mxu0 }
 0x15d   : > { %v782_v6 = vadd.f32 %v781_v35, %v645_v22 }
 0x162   : > { %v885_v9 = vpop.f32.mrf.mxu1 }
 0x163   : > { %v886_v48 = vadd.f32 %v885_v9, %v780_v8 }
 0x164   : > { %v887_v63 = vpop.f32.mrf.mxu1 }
 0x165   : > { %v888_v5 = vadd.f32 %v887_v63, %v782_v6 }
 0x19a   : > { %v1053_v55 = vpop.f32.mrf.mxu0 }
 0x19b   : > { %v1054_v30 = vadd.f32 %v1053_v55, %v886_v48 }
 0x19c   : > { %v1055_v2 = vpop.f32.mrf.mxu0 }
 0x19d   : > { %v1056_v42 = vadd.f32 %v1055_v2, %v888_v5 }
 0x1a2   : > { %v1157_v59 = vpop.f32.mrf.mxu1 }
 0x1a3   : > { %v1158_v61 = vadd.f32 %v1157_v59, %v1054_v30 }
 0x1a4   : > { %v1159_v15 = vpop.f32.mrf.mxu1 }
 0x1a5   : > { %v1162_v47 = vmul.f32 %v1158_v61, %v1158_v61  ;;  %v1537_v45 = vrot.slane %v1158_v61, 3  ;;  %v2544_v10 = vadd.f32 %v1159_v15, %v1056_v42 }
 0x1a7   : > { %v1166_v19 = vrot.slane %v1162_v47, 1  ;;  %1541 = vst [vmem:[%s2546_s5 + $0x10] sm:$0xe] %v1537_v45  ;;  %v1163_v34 = vmul.f32 %v2544_v10, %v2544_v10  ;;  %v1538_v24 = vrot.slane %v2544_v10, 3  ;;  %v1172_v27 = vrot.slane %v1162_v47, 2 }
 0x1a8   : > { %v1178_v31 = vrot.slane %v1162_v47, 3 }
 0x1a9   : > { %v1170_v26 = vadd.f32 %v1166_v19, %v1162_v47  ;;  %v1167_v29 = vrot.slane %v1163_v34, 1  ;;  %1542 = vst [vmem:[%s2546_s5 + $0x18] sm:$0xe] %v1538_v24  ;;  %v1173_v14 = vrot.slane %v1163_v34, 2  ;;  %v1179_v25 = vrot.slane %v1163_v34, 3 }
 0x1aa   : > { %v2559_v47 = vsub.s32 %v1231_v62, %v1233_v17 }
 0x1ab   : > { %v1176_v12 = vadd.f32 %v1172_v27, %v1170_v26  ;;  %v1171_v13 = vadd.f32 %v1167_v29, %v1163_v34 }
 0x1ad   : > { %v1182_v18 = vadd.f32 %v1178_v31, %v1176_v12  ;;  %v1177_v23 = vadd.f32 %v1173_v14, %v1171_v13 }
 0x1af   : > { %v1184_v33 = vmax.f32 %v1182_v18, 1.1754944e-38  ;;  %v1183_v36 = vadd.f32 %v1179_v25, %v1177_v23 }
 0x1b1   : > { %1879 = vrsqrt.f32 %v1184_v33  ;;  %v1185_v37 = vmax.f32 %v1183_v36, 1.1754944e-38 }
 0x1b3   : > { %1881 = vrsqrt.f32 %v1185_v37 }
 0x1be   : > { %v1880_v38 = vpop.eup %1879 }
 0x1bf   : > { %v1188_v58 = vmul.f32 %v1880_v38, %v1158_v61  ;;  %v1192_v60 = vrot.slane %v1880_v38, 7  ;;  %v1198_v0 = vrot.slane %v1880_v38, 6  ;;  %v1204_v4 = vrot.slane %v1880_v38, 5 }
 0x1c0   : > { %v1882_v52 = vpop.eup %1881 }
 0x1c1   : > { %v1196_v7 = vmul.f32 %v1192_v60, %v1158_v61  ;;  %v1202_v11 = vmul.f32 %v1198_v0, %v1158_v61  ;;  %v1208_v21 = vmul.f32 %v1204_v4, %v1158_v61  ;;  %v1261_v39 = vrot.slane %v1188_v58, 5 }
 0x1c2   : > { %v1307_v44 = vrot.slane %v1188_v58, 6  ;;  %v1411_v54 = vrot.slane %v1188_v58, 7  ;;  %v1193_v55 = vrot.slane %v1882_v52, 7  ;;  %v1189_v42 = vmul.f32 %v1882_v52, %v2544_v10 }
 0x1c3   : > { %v1210_v50 = vmul.f32 %v1202_v11, %v1202_v11  ;;  %v1212_v16 = vmul.f32 %v1208_v21, %v1208_v21  ;;  %v1253_v1 = vrot.slane %v1202_v11, 1  ;;  %v1265_v51 = vmul.f32 %v1261_v39, %v1208_v21 }
 0x1c4   : > { %v1301_v32 = vrot.slane %v1208_v21, 2  ;;  %v1311_v28 = vmul.f32 %v1307_v44, %v1202_v11  ;;  %v1371_v40 = vmul.f32 %v1196_v7, %v1196_v7  ;;  %v1405_v20 = vrot.slane %v1208_v21, 1 }
 0x1c5   : > { %v1216_v3 = vrot.slane %v1212_v16, 1  ;;  %v1257_v49 = vmul.f32 %v1253_v1, %v1196_v7  ;;  %v1269_v57 = vrot.slane %v1265_v51, 2  ;;  %v1373_v41 = vrot.slane %v1212_v16, 2 }
 0x1c6   : > { %v1305_v35 = vmul.f32 %v1301_v32, %v1196_v7  ;;  %v1315_v9 = vrot.slane %v1311_v28, 1  ;;  %v1415_v53 = vmul.f32 %v1411_v54, %v1196_v7  ;;  %v1409_v6 = vmul.f32 %v1405_v20, %v1202_v11 }
 0x1c7   : > { %v1220_v22 = vadd.f32 %v1216_v3, %v1210_v50  ;;  %v1273_v8 = vsub.f32 %v1257_v49, %v1269_v57  ;;  %v1377_v63 = vadd.f32 %v1373_v41, %v1371_v40  ;;  %v1345_v2 = vadd.f32 %v1269_v57, %v1257_v49 }
 0x1c8   : > { %v1319_v48 = vadd.f32 %v1315_v9, %v1305_v35  ;;  %v1419_v5 = vrot.slane %v1415_v53, 7  ;;  %v1449_v59 = vsub.f32 %v1305_v35, %v1315_v9  ;;  %v1503_v15 = vrot.slane %v1210_v50, 1 }
 0x1c9   : > { %v2554_v30 = vmul.f32 2.0, %v1220_v22  ;;  %v2557_v61 = vmul.f32 2.0, %v1377_v63  ;;  %v2561_v45 = vmul.f32 2.0, %v1273_v8  ;;  %v1197_v24 = vmul.f32 %v1193_v55, %v2544_v10 }
 0x1ca   : > { %v1423_v19 = vsub.f32 %v1409_v6, %v1419_v5  ;;  %v1475_v34 = vadd.f32 %v1419_v5, %v1409_v6  ;;  %v1321_v26 = vmul.f32 2.0, %v1319_v48  ;;  %v1347_v27 = vmul.f32 2.0, %v1345_v2 }
 0x1cb   : > { %v1199_v29 = vrot.slane %v1882_v52, 6  ;;  %v1205_v12 = vrot.slane %v1882_v52, 5  ;;  %v1224_v31 = vsub.f32 1.0, %v2554_v30  ;;  %v1451_v13 = vmul.f32 2.0, %v1449_v59 }
 0x1cc   : > { %v1262_v14 = vrot.slane %v1189_v42, 5  ;;  %v1308_v18 = vrot.slane %v1189_v42, 6  ;;  %v1381_v23 = vsub.f32 1.0, %v2557_v61  ;;  %v1412_v36 = vrot.slane %v1189_v42, 7 }
 0x1cd   : > { %v1203_v25 = vmul.f32 %v1199_v29, %v2544_v10  ;;  %v1209_v33 = vmul.f32 %v1205_v12, %v2544_v10  ;;  %v1425_v37 = vmul.f32 2.0, %v1423_v19  ;;  %v1477_v38 = vmul.f32 2.0, %v1475_v34 }
 0x1ce   : > { %v2568_v43 = vadd.f32 %v1503_v15, %v1371_v40  ;;  %v2570_v46 = vmul.f32 %v1197_v24, %v1197_v24  ;;  %v1416_v39 = vmul.f32 %v1412_v36, %v1197_v24 }
 0x1cf   : > { %v2572_v58 = vmul.f32 %v1203_v25, %v1203_v25  ;;  %v1213_v60 = vmul.f32 %v1209_v33, %v1209_v33  ;;  %v1254_v0 = vrot.slane %v1203_v25, 1  ;;  %v1266_v4 = vmul.f32 %v1262_v14, %v1209_v33 }
 0x1d0   : > { %v1302_v7 = vrot.slane %v1209_v33, 2  ;;  %v1312_v11 = vmul.f32 %v1308_v18, %v1203_v25  ;;  %v1406_v21 = vrot.slane %v1209_v33, 1  ;;  %v1420_v16 = vrot.slane %v1416_v39, 7 }
 0x1d1   : > { %v1217_v44 = vrot.slane %v1213_v60, 1  ;;  %v1258_v54 = vmul.f32 %v1254_v0, %v1197_v24  ;;  %v1270_v62 = vrot.slane %v1266_v4, 2  ;;  %v1374_v10 = vrot.slane %v1213_v60, 2 }
 0x1d2   : > { %v1306_v17 = vmul.f32 %v1302_v7, %v1197_v24  ;;  %v1316_v52 = vrot.slane %v1312_v11, 1  ;;  %v1410_v50 = vmul.f32 %v1406_v21, %v1203_v25  ;;  %v1504_v39 = vrot.slane %v2572_v58, 1 }
 0x1d3   : > { %v1221_v1 = vadd.f32 %v1217_v44, %v2572_v58  ;;  %v1274_v51 = vsub.f32 %v1258_v54, %v1270_v62  ;;  %v1346_v32 = vadd.f32 %v1270_v62, %v1258_v54  ;;  %v1378_v28 = vadd.f32 %v1374_v10, %v2570_v46 }
 0x1d4   : > { %v1320_v20 = vadd.f32 %v1316_v52, %v1306_v17  ;;  %v1424_v3 = vsub.f32 %v1410_v50, %v1420_v16  ;;  %v1450_v49 = vsub.f32 %v1306_v17, %v1316_v52  ;;  %v1476_v57 = vadd.f32 %v1420_v16, %v1410_v50 }
 0x1d5   : > { %v1223_v41 = vmul.f32 2.0, %v1221_v1  ;;  %v1276_v35 = vmul.f32 2.0, %v1274_v51  ;;  %v1348_v9 = vmul.f32 2.0, %v1346_v32  ;;  %v1380_v53 = vmul.f32 2.0, %v1378_v28 }
 0x1d6   : > { %v1322_v55 = vmul.f32 2.0, %v1320_v20  ;;  %v1426_v22 = vmul.f32 2.0, %v1424_v3  ;;  %v1452_v8 = vmul.f32 2.0, %v1450_v49  ;;  %v1478_v63 = vmul.f32 2.0, %v1476_v57 }
 0x1d7   : > { %v1225_v6 = vsub.f32 1.0, %v1223_v41  ;;  %v1279_v48 = vcombine.low %v2561_v45, %v1276_v35  ;;  %v1351_v2 = vcombine.low %v1347_v27, %v1348_v9  ;;  %v1382_v56 = vsub.f32 1.0, %v1380_v53 }
 0x1d8   : > { %v1325_v5 = vcombine.low %v1321_v26, %v1322_v55  ;;  %v1429_v30 = vcombine.low %v1425_v37, %v1426_v22  ;;  %v1455_v59 = vcombine.low %v1451_v13, %v1452_v8  ;;  %v1481_v42 = vcombine.low %v1477_v38, %v1478_v63 }
 0x1d9   : > { %v1228_v61 = vcombine.low %v1224_v31, %v1225_v6  ;;  %v1286_v15 = vrot.slane %v1279_v48, %v2559_v47  ;;  %v1358_v19 = vrot.slane %v1351_v2, %v2559_v47  ;;  %v1385_v34 = vcombine.low %v1381_v23, %v1382_v56 }
 0x1da   : > { %v1332_v24 = vrot.slane %v1325_v5, %v2559_v47  ;;  %v1436_v29 = vrot.slane %v1429_v30, %v2559_v47  ;;  %v1462_v12 = vrot.slane %v1455_v59, %v2559_v47  ;;  %v1488_v45 = vrot.slane %v1481_v42, %v2559_v47 }
 0x1db   : > { %v1235_v27 = vrot.slane %v1228_v61, %v2559_v47  ;;  %v1287_v26 = vcombine.high %v1286_v15, %v1286_v15  ;;  %v1359_v13 = vcombine.high %v1358_v19, %v1358_v19  ;;  %v1392_v31 = vrot.slane %v1385_v34, %v2559_v47 }
 0x1dc   : > { %v1333_v14 = vcombine.high %v1332_v24, %v1332_v24  ;;  %v1443_v18 = vrot.slane %v1436_v29, %v2559_v47  ;;  %v1463_v23 = vcombine.high %v1462_v12, %v1462_v12  ;;  %v1495_v25 = vrot.slane %v1488_v45, %v2559_v47 }
 0x1dd   : > { %v1242_v33 = vrot.slane %v1235_v27, %v2559_v47  ;;  %v1294_v36 = vrot.slane %v1287_v26, %v2559_v47  ;;  %v1366_v37 = vrot.slane %v1359_v13, %v2559_v47  ;;  %v1393_v38 = vcombine.high %v1392_v31, %v1392_v31 }
 0x1de   : > { %v1340_v60 = vrot.slane %v1333_v14, %v2559_v47  ;;  %v1444_v0 = vcombine.high %v1443_v18, %v1443_v18  ;;  %v1470_v4 = vrot.slane %v1463_v23, %v2559_v47  ;;  %v1496_v7 = vcombine.high %v1495_v25, %v1495_v25 }
 0x1df   : > { %v1243_v11 = vcombine.high %v1242_v33, %v1242_v33  ;;  %1634 = vst.msk [vmem:[%s2546_s5 + $0x1] ss:$8 sm:$0x3] %vm2577_vm1, %v1294_v36  ;;  %1636 = vst.msk [vmem:[%s2546_s5 + $0x3] ss:$8 sm:$0x3] %vm2577_vm1, %v1366_v37  ;;  %v1400_v21 = vrot.slane %v1393_v38, %v2559_v47  ;;  %v1508_v58 = vadd.f32 %v1504_v39, %v2570_v46 }
 0x1e0   : > { %1635 = vst.msk [vmem:[%s2546_s5 + $0x2] ss:$8 sm:$0x3] %vm2577_vm1, %v1340_v60  ;;  %1638 = vst.msk [vmem:[%s2546_s5 + $0x5] ss:$8 sm:$0x3] %vm2577_vm1, %v1444_v0 }
 0x1e1   : > { %1639 = vst.msk [vmem:[%s2546_s5 + $0x6] ss:$8 sm:$0x3] %vm2577_vm1, %v1470_v4  ;;  %1640 = vst.msk [vmem:[%s2546_s5 + $0x7] ss:$8 sm:$0x3] %vm2577_vm1, %v1496_v7 }
 0x1e2   : > { %v1509_v44 = vmul.f32 2.0, %v2568_v43  ;;  %1249 = vst.msk [vmem:[%s2546_s5] ss:$8 sm:$0x3] %vm2577_vm1, %v1243_v11  ;;  %v1510_v54 = vmul.f32 2.0, %v1508_v58 }
 0x1e3   : > { %1637 = vst.msk [vmem:[%s2546_s5 + $0x4] ss:$8 sm:$0x3] %vm2577_vm1, %v1400_v21 }
 0x1e4   : > { %v1511_v62 = vsub.f32 1.0, %v1509_v44  ;;  %v1512_v10 = vsub.f32 1.0, %v1510_v54 }
 0x1e6   : > { %v1515_v17 = vcombine.low %v1511_v62, %v1512_v10 }
 0x1e8   : > { %v1522_v52 = vrot.slane %v1515_v17, %v2559_v47 }
 0x1ea   : > { %v1523_v50 = vcombine.high %v1522_v52, %v1522_v52  ;;  %1549 = sbr.rel (!%p1954_p4) target bundleno = 503 (0x1f7), region = 36  ;;  %v1565_v43 = vld [vmem:[%s2546_s5] sm:$0xff] (%p1954_p4)  ;;  %v1567_v46 = vld [vmem:[%s2546_s5 + $0x8] sm:$0xff] (%p1954_p4) }
 0x1eb   : > { %1566 = vst [vmem:[%s1552_s9] sm:$0xff] (%p1954_p4), %v1565_v43  ;;  %1568 = vst [vmem:[%s1552_s9 + $0x8] sm:$0xff] (%p1954_p4), %v1567_v46 }
 0x1ec   : > { %v1530_v16 = vrot.slane %v1523_v50, %v2559_v47 }
 0x1ee   : > { %1641 = vst.msk [vmem:[%s2546_s5 + $0x10] ss:$8 sm:$0x3] %vm2577_vm1, %v1530_v16 }
 0x1f5   : > { %v1569_v1 = vld [vmem:[%s2546_s5 + $0x10] sm:$0xff]  ;;  %v1571_v47 = vld [vmem:[%s2546_s5 + $0x18] sm:$0xff] }
 0x1f6   : > { %1570 = vst [vmem:[%s1552_s9 + $0x20] sm:$0xff] %v1569_v1  ;;  %1572 = vst [vmem:[%s1552_s9 + $0x28] sm:$0xff] %v1571_v47 }
 0x1f7 PF: > { %p10_p8 = scmp.ge.s32.totalorder %s1944_s16, 4   ;;  %s2802_s12 = smov %s1901_s13 }
 0x1f8   : > { %s2803_s13 = smov %s1952_s19  ;;  %s2804_s14 = smov %s1944_s16 }
 0x1f9   :  { %12 = sbr.rel (!%p10_p8) target bundleno = 2 (0x2), region = 93 }

</bundles_post_ra>
